<compile_context>
chip_gen: v7x
topology: tpu7x:2x2x1
jax: 0.10.0
libtpu: 0.0.40
codegen_flags: <defaults>
</compile_context>

<pallas_src>
import functools

import numpy as np
import jax
import jax.numpy as jnp
from jax.experimental import pallas as pl
from jax.experimental.pallas import tpu as pltpu


# ----------------------------------------------------------------------------
# Host-side preprocessing (mirrors one_hot2dist from the reference module).
# ----------------------------------------------------------------------------
def _edt(mask: np.ndarray) -> np.ndarray:
    """Exact Euclidean distance transform (brute force, n-D).

    For each True voxel: distance to the nearest False voxel. 0 at False voxels.
    Matches scipy.ndimage.distance_transform_edt when the mask contains zeros.
    """
    bg = np.argwhere(~mask)                               # [M, ndim] background coords
    if bg.shape[0] == 0:
        return np.zeros(mask.shape, dtype=np.float64)
    coords = np.argwhere(np.ones(mask.shape, dtype=bool)) # [N, ndim] all coords
    d2 = ((coords[:, None, :].astype(np.float64) -
           bg[None, :, :].astype(np.float64)) ** 2).sum(-1)
    d = np.sqrt(d2.min(axis=1)).reshape(mask.shape)
    return d * mask


def one_hot2dist(seg: np.ndarray) -> np.ndarray:
    # NOTE: mirrors the reference exactly -- iterates the *leading* axis of `seg`
    # (batch for a [B, C, H, W] target) and applies the EDT over the remaining dims.
    C = len(seg)
    res = np.zeros_like(seg)
    for c in range(C):
        posmask = seg[c].astype(bool)
        if posmask.any():
            negmask = ~posmask
            res[c] = _edt(negmask) * negmask - (_edt(posmask) - 1) * posmask
    return res


# ----------------------------------------------------------------------------
# Pallas kernel: channel softmax + elementwise product + partial-sum accumulation
# ----------------------------------------------------------------------------
def _boundary_loss_kernel(x_ref, d_ref, o_ref, *, C, TS):
    # x_ref, d_ref: (1, C, TS, 128) tiles; o_ref: (1, 8, 128) per-batch partial sums.
    j = pl.program_id(1)

    @pl.when(j == 0)
    def _():
        o_ref[...] = jnp.zeros_like(o_ref)

    # Pull the C channel slabs as full (TS, 128) tiles (pure VPU work from here on).
    xs = [x_ref[0, c].astype(jnp.float32) for c in range(C)]
    ds = [d_ref[0, c].astype(jnp.float32) for c in range(C)]

    # Channel max (elementwise over full tiles).
    x_max = xs[0]
    for c in range(1, C):
        x_max = jnp.maximum(x_max, xs[c])

    # num = sum_c exp(x_c - xmax) * d_c ; den = sum_c exp(x_c - xmax)
    e0 = jnp.exp(xs[0] - x_max)
    den = e0
    num = e0 * ds[0]
    for c in range(1, C):
        e = jnp.exp(xs[c] - x_max)
        den = den + e
        num = num + e * ds[c]

    # One divide per column instead of C divides per element.
    contrib = num * pl.reciprocal(den)                       # (TS, 128)

    # Collapse the TS sublanes into an (8, 128) vector partial (tile-aligned reshape,
    # elementwise adds only) and accumulate into the resident output block.
    partial = jnp.sum(contrib.reshape(TS // 8, 8, 128), axis=0)   # (8, 128)
    o_ref[...] += partial[None, :, :]


def boundary_loss(output: jax.Array, dist: jax.Array) -> jax.Array:
    """output, dist: [B, C, H, W]. Returns scalar 0.01 * mean(softmax_c(output) * dist)."""
    B, C, H, W = output.shape
    HW = H * W
    LAN = 128
    SUB = 8

    # Tile sizing: TS sublanes of 128 lanes per block, TS a multiple of 8, capped at 512
    # (C=4, TS=512 -> 1 MiB/block/input; ~4 MiB double-buffered -- fits v5e/v6e/v7x).
    s_needed = pl.cdiv(HW, LAN)
    TS = min(512, ((s_needed + SUB - 1) // SUB) * SUB)
    s_pad = ((s_needed + TS - 1) // TS) * TS
    hw_pad = s_pad * LAN

    # Free reshapes only -- no transposes. Zero-pad ragged spatial sizes (padded dist
    # columns are 0 so they contribute 0 to the sum; the mean uses the original numel).
    x = output.reshape(B, C, HW).astype(jnp.float32)
    d = dist.reshape(B, C, HW).astype(jnp.float32)
    if hw_pad != HW:
        pad = ((0, 0), (0, 0), (0, hw_pad - HW))
        x = jnp.pad(x, pad)
        d = jnp.pad(d, pad)
    x = x.reshape(B, C, s_pad, LAN)
    d = d.reshape(B, C, s_pad, LAN)

    grid = (B, s_pad // TS)
    kernel = functools.partial(_boundary_loss_kernel, C=C, TS=TS)

    partials = pl.pallas_call(
        kernel,
        out_shape=jax.ShapeDtypeStruct((B, SUB, LAN), jnp.float32),
        grid_spec=pltpu.PrefetchScalarGridSpec(
            num_scalar_prefetch=0,
            grid=grid,
            in_specs=[
                pl.BlockSpec((1, C, TS, LAN), lambda b, j: (b, 0, j, 0)),
                pl.BlockSpec((1, C, TS, LAN), lambda b, j: (b, 0, j, 0)),
            ],
            out_specs=pl.BlockSpec((1, SUB, LAN), lambda b, j: (b, 0, 0)),
        ),
        compiler_params=pltpu.CompilerParams(
            # batch axis parallel (uses both TCs on v7x), spatial reduction arbitrary.
            dimension_semantics=("parallel", "arbitrary"),
        ),
    )(x, d)

    scale = 0.01 / float(B * C * H * W)
    return jnp.sum(partials) * scale


# Pure-JAX reference for verification.
def boundary_loss_ref(output, dist):
    p = jax.nn.softmax(output.astype(jnp.float32), axis=1)
    return 0.01 * jnp.mean(p * dist.astype(jnp.float32))


if __name__ == "__main__":
    B, C, H, W = 2, 4, 16, 16
    key = jax.random.PRNGKey(0)
    k1, k2 = jax.random.split(key)

    # Network logits.
    logits = jax.random.normal(k1, (B, C, H, W), dtype=jnp.float32)

    # One-hot segmentation target [B, C, H, W] (float32, as fed to the torch module).
    labels = jax.random.randint(k2, (B, H, W), 0, C)
    target = jnp.transpose(jax.nn.one_hot(labels, C, dtype=jnp.float32), (0, 3, 1, 2))

    # Host-side signed distance map (preprocessing, matches the reference's numpy path).
    dist_np = one_hot2dist(np.asarray(target))
    dist = jnp.asarray(dist_np, dtype=jnp.float32)

    loss = boundary_loss(logits, dist)
    loss = jax.block_until_ready(loss)

    ref = jax.block_until_ready(boundary_loss_ref(logits, dist))
    np.testing.assert_allclose(np.asarray(loss), np.asarray(ref), rtol=1e-5, atol=1e-6)

    print("KERNEL_OK")
</pallas_src>

<mosaic_0001>
module attributes {stable_mosaic.version = 11 : i64} {
  func.func @_boundary_loss_kernel(%arg0: i32, %arg1: i32, %arg2: memref<1x4x8x128xf32, #tpu.memory_space<vmem>>, %arg3: memref<1x4x8x128xf32, #tpu.memory_space<vmem>>, %arg4: memref<1x8x128xf32, #tpu.memory_space<vmem>>) attributes {dimension_semantics = [#tpu.dimension_semantics<parallel>, #tpu.dimension_semantics<arbitrary>], iteration_bounds = array<i64: 2, 1>, scalar_prefetch = 0 : i64, scratch_operands = 0 : i64, tpu.core_type = #tpu.core_type<tc>, window_params = [{transform_indices = @transform_0, window_bounds = array<i64: 1, 4, 8, 128>}, {transform_indices = @transform_1, window_bounds = array<i64: 1, 4, 8, 128>}, {transform_indices = @transform_2, window_bounds = array<i64: 1, 8, 128>}]} {
    %c0_i32 = arith.constant 0 : i32
    %0 = arith.cmpi eq, %arg1, %c0_i32 : i32
    %1 = arith.extui %0 : i1 to i32
    %c0_i32_0 = arith.constant 0 : i32
    %2 = arith.cmpi ne, %1, %c0_i32_0 : i32
    scf.if %2 {
      %cst_35 = arith.constant 0.000000e+00 : f32
      %48 = vector.broadcast %cst_35 : f32 to vector<1x8x128xf32>
      %c0_36 = arith.constant 0 : index
      %c0_37 = arith.constant 0 : index
      %c0_38 = arith.constant 0 : index
      %49 = vector.load %arg4[%c0_36, %c0_37, %c0_38] : memref<1x8x128xf32, #tpu.memory_space<vmem>>, vector<1x8x128xf32>
      tpu.vector_store %arg4[%c0_36, %c0_37, %c0_38], %48 {strides = array<i32>} : memref<1x8x128xf32, #tpu.memory_space<vmem>>, vector<1x8x128xf32>,
    } else {
    }
    %c0 = arith.constant 0 : index
    %c0_1 = arith.constant 0 : index
    %c0_2 = arith.constant 0 : index
    %c0_3 = arith.constant 0 : index
    %3 = vector.load %arg2[%c0, %c0_1, %c0_2, %c0_3] : memref<1x4x8x128xf32, #tpu.memory_space<vmem>>, vector<1x1x8x128xf32>
    %4 = vector.shape_cast %3 : vector<1x1x8x128xf32> to vector<8x128xf32>
    %c0_4 = arith.constant 0 : index
    %c1 = arith.constant 1 : index
    %c0_5 = arith.constant 0 : index
    %c0_6 = arith.constant 0 : index
    %5 = vector.load %arg2[%c0_4, %c1, %c0_5, %c0_6] : memref<1x4x8x128xf32, #tpu.memory_space<vmem>>, vector<1x1x8x128xf32>
    %6 = vector.shape_cast %5 : vector<1x1x8x128xf32> to vector<8x128xf32>
    %c0_7 = arith.constant 0 : index
    %c2 = arith.constant 2 : index
    %c0_8 = arith.constant 0 : index
    %c0_9 = arith.constant 0 : index
    %7 = vector.load %arg2[%c0_7, %c2, %c0_8, %c0_9] : memref<1x4x8x128xf32, #tpu.memory_space<vmem>>, vector<1x1x8x128xf32>
    %8 = vector.shape_cast %7 : vector<1x1x8x128xf32> to vector<8x128xf32>
    %c0_10 = arith.constant 0 : index
    %c3 = arith.constant 3 : index
    %c0_11 = arith.constant 0 : index
    %c0_12 = arith.constant 0 : index
    %9 = vector.load %arg2[%c0_10, %c3, %c0_11, %c0_12] : memref<1x4x8x128xf32, #tpu.memory_space<vmem>>, vector<1x1x8x128xf32>
    %10 = vector.shape_cast %9 : vector<1x1x8x128xf32> to vector<8x128xf32>
    %c0_13 = arith.constant 0 : index
    %c0_14 = arith.constant 0 : index
    %c0_15 = arith.constant 0 : index
    %c0_16 = arith.constant 0 : index
    %11 = vector.load %arg3[%c0_13, %c0_14, %c0_15, %c0_16] : memref<1x4x8x128xf32, #tpu.memory_space<vmem>>, vector<1x1x8x128xf32>
    %12 = vector.shape_cast %11 : vector<1x1x8x128xf32> to vector<8x128xf32>
    %c0_17 = arith.constant 0 : index
    %c1_18 = arith.constant 1 : index
    %c0_19 = arith.constant 0 : index
    %c0_20 = arith.constant 0 : index
    %13 = vector.load %arg3[%c0_17, %c1_18, %c0_19, %c0_20] : memref<1x4x8x128xf32, #tpu.memory_space<vmem>>, vector<1x1x8x128xf32>
    %14 = vector.shape_cast %13 : vector<1x1x8x128xf32> to vector<8x128xf32>
    %c0_21 = arith.constant 0 : index
    %c2_22 = arith.constant 2 : index
    %c0_23 = arith.constant 0 : index
    %c0_24 = arith.constant 0 : index
    %15 = vector.load %arg3[%c0_21, %c2_22, %c0_23, %c0_24] : memref<1x4x8x128xf32, #tpu.memory_space<vmem>>, vector<1x1x8x128xf32>
    %16 = vector.shape_cast %15 : vector<1x1x8x128xf32> to vector<8x128xf32>
    %c0_25 = arith.constant 0 : index
    %c3_26 = arith.constant 3 : index
    %c0_27 = arith.constant 0 : index
    %c0_28 = arith.constant 0 : index
    %17 = vector.load %arg3[%c0_25, %c3_26, %c0_27, %c0_28] : memref<1x4x8x128xf32, #tpu.memory_space<vmem>>, vector<1x1x8x128xf32>
    %18 = vector.shape_cast %17 : vector<1x1x8x128xf32> to vector<8x128xf32>
    %19 = arith.maximumf %4, %6 : vector<8x128xf32>
    %20 = arith.maximumf %19, %8 : vector<8x128xf32>
    %21 = arith.maximumf %20, %10 : vector<8x128xf32>
    %22 = arith.subf %4, %21 : vector<8x128xf32>
    %23 = math.exp %22 : vector<8x128xf32>
    %24 = arith.mulf %23, %12 : vector<8x128xf32>
    %25 = arith.subf %6, %21 : vector<8x128xf32>
    %26 = math.exp %25 : vector<8x128xf32>
    %27 = arith.addf %23, %26 : vector<8x128xf32>
    %28 = arith.mulf %26, %14 : vector<8x128xf32>
    %29 = arith.addf %24, %28 : vector<8x128xf32>
    %30 = arith.subf %8, %21 : vector<8x128xf32>
    %31 = math.exp %30 : vector<8x128xf32>
    %32 = arith.addf %27, %31 : vector<8x128xf32>
    %33 = arith.mulf %31, %16 : vector<8x128xf32>
    %34 = arith.addf %29, %33 : vector<8x128xf32>
    %35 = arith.subf %10, %21 : vector<8x128xf32>
    %36 = math.exp %35 : vector<8x128xf32>
    %37 = arith.addf %32, %36 : vector<8x128xf32>
    %38 = arith.mulf %36, %18 : vector<8x128xf32>
    %39 = arith.addf %34, %38 : vector<8x128xf32>
    %40 = tpu.reciprocal %37 : vector<8x128xf32> -> vector<8x128xf32>
    %41 = arith.mulf %39, %40 : vector<8x128xf32>
    %42 = vector.shape_cast %41 : vector<8x128xf32> to vector<1x8x128xf32>
    %cst = arith.constant dense<0.000000e+00> : vector<8x128xf32>
    %43 = vector.multi_reduction <add>, %42, %cst [0] : vector<1x8x128xf32> to vector<8x128xf32>
    %c0_29 = arith.constant 0 : index
    %c0_30 = arith.constant 0 : index
    %c0_31 = arith.constant 0 : index
    %44 = vector.load %arg4[%c0_29, %c0_30, %c0_31] : memref<1x8x128xf32, #tpu.memory_space<vmem>>, vector<1x8x128xf32>
    %45 = vector.shape_cast %43 : vector<8x128xf32> to vector<1x8x128xf32>
    %46 = arith.addf %44, %45 : vector<1x8x128xf32>
    %c0_32 = arith.constant 0 : index
    %c0_33 = arith.constant 0 : index
    %c0_34 = arith.constant 0 : index
    %47 = vector.load %arg4[%c0_32, %c0_33, %c0_34] : memref<1x8x128xf32, #tpu.memory_space<vmem>>, vector<1x8x128xf32>
    tpu.vector_store %arg4[%c0_32, %c0_33, %c0_34], %46 {strides = array<i32>} : memref<1x8x128xf32, #tpu.memory_space<vmem>>, vector<1x8x128xf32>,
    return
  }
  func.func @transform_0(%arg0: i32, %arg1: i32) -> (i32, i32, i32, i32) {
    %c0_i32 = arith.constant 0 : i32
    %c0_i32_0 = arith.constant 0 : i32
    %c0_i32_1 = arith.constant 0 : i32
    return %arg0, %c0_i32, %arg1, %c0_i32_0 : i32, i32, i32, i32
  }
  func.func @transform_1(%arg0: i32, %arg1: i32) -> (i32, i32, i32, i32) {
    %c0_i32 = arith.constant 0 : i32
    %c0_i32_0 = arith.constant 0 : i32
    %c0_i32_1 = arith.constant 0 : i32
    return %arg0, %c0_i32, %arg1, %c0_i32_0 : i32, i32, i32, i32
  }
  func.func @transform_2(%arg0: i32, %arg1: i32) -> (i32, i32, i32) {
    %c0_i32 = arith.constant 0 : i32
    %c0_i32_0 = arith.constant 0 : i32
    %c0_i32_1 = arith.constant 0 : i32
    return %arg0, %c0_i32, %c0_i32_0 : i32, i32, i32
  }
}

</mosaic_0001>

<bundles_post_ra>
// kernel: tpu_custom_call.1
= control target key start
LH: loop header
LB: loop body
LE: loop exit
PB: predicated region body
PF: predicated region fallthrough
CT: control target
= control target key end

     0   :  { %7 = vsyncpa [#allocation3], 0  ;;  %s904_s0 = inlined_call_operand.hbm [shape: f32[2,4,8,128], index: 0, kind: input, shape index: {}]   ;;  %s905_s1 = inlined_call_operand.hbm [shape: f32[2,4,8,128], index: 1, kind: input, shape index: {}]   ;;  %s906_s2 = inlined_call_operand.hbm [shape: f32[2,8,128], index: 2, kind: output, shape index: {}]  }
   0x1   :  { %9 = vsyncpa [#allocation3 + $0x1], 0 }
   0x2   :  { %10 = vsyncpa [#allocation6], 0 }
   0x3   :  { %12 = vsyncpa [#allocation6 + $0x1], 0 }
   0x4   :  { %13 = vsyncpa [#allocation4], 0 }
   0x5   :  { %15 = vsyncpa [#allocation4 + $0x1], 0  ;;  %s663_s9 = smov 0   ;;  %s665_s10 = smov 0  }
   0x6   :  { %s667_s11 = smov 0   ;;  %s669_s12 = smov 0  }
   0x7   :  { %s671_s13 = smov 0   ;;  %s673_s14 = smov 0  }
   0x8 LB: > { %s389_s15 = sadd.s32 4294967295, %s641_s14   ;;  %s390_s16 = sadd.s32 4294967294, %s641_s14   ;;  %s641_s14 = sphi %s673_s14, %s21_s14   ;;  %s637_s13 = sphi %s671_s13, %s924_s13   ;;  %s633_s12 = sphi %s669_s12, %s923_s12   ;;  %s629_s11 = sphi %s667_s11, %s922_s11   ;;  %s625_s10 = sphi %s665_s10, %s921_s10   ;;  %s621_s9 = sphi %s663_s9, %s920_s9  }
   0x9   : > { %s33_s17 = sadd.s32 1, %s637_s13  ;;  %s42_s18 = sadd.s32 1, %s629_s11 }
   0xa   : > { %p35_p0 = scmp.ge.s32.totalorder %s33_s17, 2  ;;  %p49_p1 = scmp.ne.s32.totalorder %s629_s11, %s625_s10 }
   0xb   : > { %p50_p2 = scmp.eq.s32.totalorder %s641_s14, 0  ;;  %p55_p3 = scmp.ne.s32.totalorder %s625_s10, %s621_s9 }
   0xc   : > { %s926_s17 = smov (%p35_p0, %s33_s17), 0  ;;  %p56_p5 = scmp.eq.s32.totalorder %s389_s15, 0 }
   0xd   : > { %p704_p4 = por %p50_p2, %p49_p1  ;;  %s37_s20 = ssub.s32 %s637_s13, %s926_s17 }
   0xe   : > { %p107_p6 = scmp.eq.s32.totalorder %s389_s15, 1  ;;  %p40_p7 = scmp.eq.s32.totalorder %s37_s20, 0 }
   0xf   : > { %p710_p8 = por %p56_p5, %p55_p3  ;;  %p113_p10 = scmp.eq.s32.totalorder %s390_s16, 1 }
  0x10   : > { %p714_p9 = por %p107_p6, %p49_p1  ;;  %p432_p13 = scmp.lt.s32.totalorder %s641_s14, 2 }
  0x11   : > { %s910_s21 = scalar_select %p710_p8, 1, 0 }
  0x12   : > { %s911_s22 = scalar_select %p714_p9, 1, 0 }
  0x13   : > { %s719_s23 = scalar_select %p40_p7, %s629_s11, %s42_s18  }
  0x14   : > { %p721_p11 = por %p113_p10, %p55_p3  ;;  %s728_s25 = sand.u32 1, %s629_s11  }
  0x15   : > { %s393_s26 = sshll.u32 %s728_s25, 5  ;;  %s413_s27 = sshll.u32 %s637_s13, 9 }
  0x16   : > { %s912_s24 = scalar_select %p721_p11, 1, 0 }
  0x17   : > { %s737_s30 = scalar_lea.hbm %s904_s0, %s413_s27  ;;  %s137_s3 = scalar_lea.vmem [#allocation2], %s393_s26 }
  0x18   : > { %s145_s4 = sshll.u32 %s137_s3, 4  ;;  %p745_p0 = pnand %p432_p13, %p704_p4  ;;  %s741_s4 = int_to_ptr.vmem [resolvable:$true] %s145_s4 }
  0x19   : > { %s134_s6 = scalar_lea.sflag [#allocation3], %s728_s25  ;;  %s495_s7 = scalar_lea.hbm %s737_s30, 512 }
  0x1a   : > { %p496_p2 = scmp.ne.s32.totalorder %s737_s30, %s495_s7  ;;  %p497_p3 = pneg %p745_p0 }
  0x1b   : > { %s500_s16 = scalar_lea.hbm %s904_s0, 1024  ;;  %p501_p4 = scmp.lt.u32.totalorder %s737_s30, %s904_s0 }
  0x1c   : > { %p498_p5 = pnand %p497_p3, %p496_p2  ;;  %p502_p7 = scmp.lt.u32.totalorder %s500_s16, %s495_s7 }
  0x1d   : > { %p504_p13 = scmp.lt.u32.totalorder %s495_s7, %s737_s30 }
  0x1e   : > { %p499_p6 = pneg %p498_p5  ;;  %p503_p10 = por %p502_p7, %p501_p4 }
  0x20   : > { %p505_p12 = por %p504_p13, %p503_p10 }
  0x22   : > { %p506_p1 = pnand %p505_p12, %p499_p6 }
  0x24   : > { %509 = shalt.err (!%p506_p1)
}
  0x25   : > { %s510_s20 = scalar_lea.vmem %s741_s4, 512  ;;  %s643_s28 = smov [#allocation2]  }
  0x26   : > { %p511_p2 = scmp.ne.s32.totalorder %s741_s4, %s510_s20  ;;  %s515_s29 = sshll.u32 %s643_s28, 4  ;;  %s516_s29 = int_to_ptr.vmem [resolvable:$false] %s515_s29 }
  0x27   : > { %s517_s3 = scalar_lea.vmem %s516_s29, 1024  ;;  %p518_p9 = scmp.lt.s32.totalorder %s741_s4, %s516_s29 }
  0x28   : > { %p513_p5 = pnand %p511_p2, %p497_p3  ;;  %p519_p4 = scmp.lt.s32.totalorder %s517_s3, %s510_s20 }
  0x2a   : > { %p514_p11 = pneg %p513_p5  ;;  %p520_p7 = por %p519_p4, %p518_p9 }
  0x2c   : > { %p521_p10 = pnand %p520_p7, %p514_p11 }
  0x2e   : > { %524 = shalt.err (!%p521_p10)
}
  0x2f   : > { %s644_s7 = smov 128   ;;  %s645_s8 = smov 8  }
  0x30   : > { %424 = dma.hbm_to_vmem [thread:$0]  (!%p745_p0), %s737_s30, 512, %s741_s4, %s134_s6, %s644_s7, %s644_s7, %s645_s8  }
  0x31   : > { %p175_p9 = scmp.lt.s32.totalorder %s641_s14, 3  ;;  %s787_s18 = scalar_lea.hbm %s905_s1, %s413_s27 }
  0x32   : > { %p914_p11 = scmp.ge.s32.totalorder %s641_s14, 1  ;;  %s159_s20 = scalar_lea.vmem [#allocation5], %s393_s26 }
  0x33   : > { %s167_s28 = sshll.u32 %s159_s20, 4  ;;  %s156_s30 = scalar_lea.sflag [#allocation6], %s728_s25  ;;  %s797_s28 = int_to_ptr.vmem [resolvable:$true] %s167_s28 }
  0x34   : > { %p791_p12 = pnand %p914_p11, %p175_p9  ;;  %s525_s4 = scalar_lea.hbm %s787_s18, 512 }
  0x35   : > { %p526_p1 = scmp.ne.s32.totalorder %s787_s18, %s525_s4  ;;  %s530_s29 = scalar_lea.hbm %s905_s1, 1024 }
  0x36   : > { %p531_p2 = scmp.lt.u32.totalorder %s787_s18, %s905_s1  ;;  %p532_p5 = scmp.lt.u32.totalorder %s530_s29, %s525_s4 }
  0x37   : > { %p528_p6 = pnand %p526_p1, %p497_p3  ;;  %p534_p7 = scmp.lt.u32.totalorder %s525_s4, %s787_s18 }
  0x38   : > { %p533_p4 = por %p532_p5, %p531_p2 }
  0x39   : > { %p529_p13 = pneg %p528_p6 }
  0x3a   : > { %p535_p10 = por %p534_p7, %p533_p4 }
  0x3c   : > { %p536_p9 = pnand %p535_p10, %p529_p13 }
  0x3e   : > { %539 = shalt.err (!%p536_p9)
}
  0x3f   : > { %s540_s26 = scalar_lea.vmem %s797_s28, 512  ;;  %s646_s16 = smov [#allocation5]  }
  0x40   : > { %p541_p11 = scmp.ne.s32.totalorder %s797_s28, %s540_s26  ;;  %s545_s20 = sshll.u32 %s646_s16, 4  ;;  %s546_s20 = int_to_ptr.vmem [resolvable:$false] %s545_s20 }
  0x41   : > { %s547_s27 = scalar_lea.vmem %s546_s20, 1024  ;;  %p548_p8 = scmp.lt.s32.totalorder %s797_s28, %s546_s20 }
  0x42   : > { %p543_p1 = pnand %p541_p11, %p497_p3  ;;  %p549_p2 = scmp.lt.s32.totalorder %s547_s27, %s540_s26 }
  0x44   : > { %p544_p6 = pneg %p543_p1  ;;  %p550_p5 = por %p549_p2, %p548_p8 }
  0x46   : > { %p551_p4 = pnand %p550_p5, %p544_p6 }
  0x48   : > { %554 = shalt.err (!%p551_p4)
}
  0x49   : > { %427 = dma.hbm_to_vmem [thread:$0]  (!%p745_p0), %s787_s18, 512, %s797_s28, %s156_s30, %s644_s7, %s644_s7, %s645_s8  }
  0x4a   : > { %179 = sbr.rel (%p791_p12) target bundleno = 140 (0x8c), region = 28  ;;  %s831_s4 = sand.u32 (!%p791_p12), 1, %s625_s10  }
  0x4b   : > { %s400_s6 = sshll.u32 (!%p791_p12), %s831_s4, 5  ;;  %s182_s29 = scalar_lea.sflag (!%p791_p12), [#allocation3], %s831_s4 }
  0x4c   : > { %s185_s5 = scalar_lea.vmem (!%p791_p12), [#allocation2], %s400_s6  ;;  %p916_p8 = scmp.ne.s32.totalorder (!%p791_p12), %s910_s21, 0 }
  0x51   : > { %608 = dma.done.wait (%p916_p8), %s182_s29, 512  }
  0x52   : > { %610 = vsyncadd (%p916_p8), %s182_s29, 4294966784  ;;  %s191_s25 = scalar_lea.sflag [#allocation6], %s831_s4  ;;  %s840_s7 = scalar_lea.vmem [#allocation5], %s400_s6 }
  0x53   : > { %612 = dma.done.wait (%p916_p8), %s191_s25, 512  }
  0x54   : > { %614 = vsyncadd (%p916_p8), %s191_s25, 4294966784  ;;  %v225_v0 = vld [vmem:[%s185_s5] sm:$0xff]  ;;  %v403_v1 = vld [vmem:[%s185_s5 + $0x8] sm:$0xff]  ;;  %s402_s21 = sshll.u32 %s831_s4, 3  ;;  %s410_s8 = sshll.u32 %s633_s12, 7 }
  0x55   : > { %v404_v2 = vld [vmem:[%s185_s5 + $0x10] sm:$0xff]  ;;  %v239_v3 = vmax.f32 %v225_v0, %v403_v1  ;;  %v405_v4 = vld [vmem:[%s185_s5 + $0x18] sm:$0xff]  ;;  %v232_v16 = vld [vmem:[%s840_s7] sm:$0xff]  ;;  %s219_s18 = scalar_lea.vmem [#allocation7], %s402_s21  ;;  %s855_s3 = scalar_lea.hbm %s906_s2, %s410_s8 }
  0x56   : > { %v406_v17 = vld [vmem:[%s840_s7 + $0x8] sm:$0xff]  ;;  %v407_v24 = vld [vmem:[%s840_s7 + $0x10] sm:$0xff]  ;;  %v408_v29 = vld [vmem:[%s840_s7 + $0x18] sm:$0xff]  ;;  %s284_s19 = sshll.u32 %s219_s18, 4  ;;  %s271_s15 = scalar_lea.sflag [#allocation4], %s831_s4  ;;  %s857_s19 = int_to_ptr.vmem [resolvable:$true] %s284_s19 }
  0x57   : > { %v240_v5 = vmax.f32 %v239_v3, %v404_v2  ;;  %s555_s26 = scalar_lea.vmem %s857_s19, 128  ;;  %p917_p3 = scmp.ne.s32.totalorder %s911_s22, 0 }
  0x58   : > { %p556_p0 = scmp.ne.s32.totalorder %s857_s19, %s555_s26  ;;  %s647_s12 = smov [#allocation7]  }
  0x59   : > { %v241_v6 = vmax.f32 %v240_v5, %v405_v4  ;;  %s559_s16 = sshll.u32 %s647_s12, 4  ;;  %s560_s16 = int_to_ptr.vmem [resolvable:$false] %s559_s16 }
  0x5a   : > { %p557_p12 = pnand %p556_p0, %p917_p3  ;;  %s561_s20 = scalar_lea.vmem %s560_s16, 256 }
  0x5b   : > { %v242_v7 = vsub.f32 %v225_v0, %v241_v6  ;;  %v246_v8 = vsub.f32 %v403_v1, %v241_v6  ;;  %v252_v9 = vsub.f32 %v404_v2, %v241_v6  ;;  %v258_v10 = vsub.f32 %v405_v4, %v241_v6  ;;  %p562_p7 = scmp.lt.s32.totalorder %s857_s19, %s560_s16  ;;  %p563_p10 = scmp.lt.s32.totalorder %s561_s20, %s555_s26 }
  0x5c   : > { %p558_p13 = pneg %p557_p12 }
  0x5d   : > { %v243_v11 = vmul.f32 1.442695, %v242_v7  ;;  %v247_v12 = vmul.f32 1.442695, %v246_v8  ;;  %v253_v13 = vmul.f32 1.442695, %v252_v9  ;;  %p564_p9 = por %p563_p10, %p562_p7 }
  0x5e   : > { %v259_v14 = vmul.f32 1.442695, %v258_v10 }
  0x5f   : > { %485 = vpow2.f32 %v243_v11  ;;  %p565_p11 = pnand %p564_p9, %p558_p13 }
  0x60   : > { %487 = vpow2.f32 %v247_v12 }
  0x61   : > { %489 = vpow2.f32 %v253_v13 }
  0x62   : > { %491 = vpow2.f32 %v259_v14 }
  0x69   : > { %v486_v15 = vpop.eup %485 }
  0x6a   : > { %v488_v18 = vpop.eup %487  ;;  %v245_v22 = vmul.f32 %v486_v15, %v232_v16 }
  0x6b   : > { %v490_v19 = vpop.eup %489  ;;  %v249_v20 = vadd.f32 %v488_v18, %v486_v15  ;;  %v250_v23 = vmul.f32 %v488_v18, %v406_v17 }
  0x6c   : > { %v492_v21 = vpop.eup %491  ;;  %v256_v28 = vmul.f32 %v490_v19, %v407_v24 }
  0x6d   : > { %v255_v25 = vadd.f32 %v490_v19, %v249_v20  ;;  %v251_v27 = vadd.f32 %v250_v23, %v245_v22  ;;  %v262_v31 = vmul.f32 %v492_v21, %v408_v29 }
  0x6f   : > { %v261_v26 = vadd.f32 %v492_v21, %v255_v25  ;;  %v257_v30 = vadd.f32 %v256_v28, %v251_v27 }
  0x71   : > { %493 = vrcp.f32 %v261_v26  ;;  %v263_v32 = vadd.f32 %v262_v31, %v257_v30 }
  0x7b   : > { %v494_v33 = vpop.eup %493 }
  0x7c   : > { %v265_v34 = vmul.f32 %v494_v33, %v263_v32 }
  0x7e   : > { %269 = vst [vmem:[%s219_s18] sm:$0xff] %v265_v34 }
  0x7f   : > { %568 = shalt.err (!%p565_p11)
}
  0x80   : > { %s569_s27 = scalar_lea.hbm %s855_s3, 128  ;;  %s573_s29 = scalar_lea.hbm %s906_s2, 256 }
  0x81   : > { %p570_p1 = scmp.ne.s32.totalorder %s855_s3, %s569_s27  ;;  %p574_p5 = scmp.lt.u32.totalorder %s855_s3, %s906_s2 }
  0x82   : > { %p575_p4 = scmp.lt.u32.totalorder %s573_s29, %s569_s27  ;;  %p577_p0 = scmp.lt.u32.totalorder %s569_s27, %s855_s3 }
  0x83   : > { %p571_p6 = pnand %p570_p1, %p917_p3 }
  0x84   : > { %p576_p8 = por %p575_p4, %p574_p5 }
  0x85   : > { %p572_p2 = pneg %p571_p6 }
  0x86   : > { %p578_p12 = por %p577_p0, %p576_p8 }
  0x88   : > { %p579_p13 = pnand %p578_p12, %p572_p2 }
  0x8a   : > { %582 = shalt.err (!%p579_p13)
}
  0x8b   : > { %419 = dma.vmem_to_hbm [thread:$0]  (%p917_p3), %s857_s19, 128, %s855_s3, %s271_s15  }
  0x8c PF: > { %s296_s7 = sand.u32 1, %s621_s9   ;;  %p918_p7 = scmp.ne.s32.totalorder %s912_s24, 0 }
  0x8d   : > { %p919_p10 = scmp.ge.s32.totalorder %s641_s14, 2  ;;  %s297_s21 = scalar_lea.sflag [#allocation4], %s296_s7 }
  0x8f   : > { %p429_p9 = pnand %p919_p10, %p918_p7 }
  0x91   : > { %616 = dma.done.wait (!%p429_p9), %s297_s21, 128  }
  0x92   : > { %618 = vsyncadd (!%p429_p9), %s297_s21, 4294967168  ;;  %s21_s14 = sadd.s32 1, %s641_s14   ;;  %s920_s9 = smov %s625_s10 }
  0x93   : > { %p18_p11 = scmp.ge.s32.totalorder %s21_s14, 4   ;;  %s921_s10 = smov %s629_s11 }
  0x94   : > { %s922_s11 = smov %s719_s23  ;;  %s923_s12 = smov %s637_s13 }
  0x95   : > { %s924_s13 = smov %s926_s17  ;;  %20 = sbr.rel (!%p18_p11) target bundleno = 8 (0x8), region = 96 }
  0x9c   :  { %302 = vsyncpa [#allocation3], 1 }
  0x9d   :  { %304 = vsyncpa [#allocation3 + $0x1], 1 }
  0x9e   :  { %305 = vsyncpa [#allocation6], 1 }
  0x9f   :  { %307 = vsyncpa [#allocation6 + $0x1], 1 }
  0xa0   :  { %308 = vsyncpa [#allocation4], 1 }
  0xa1   :  { %310 = vsyncpa [#allocation4 + $0x1], 1 }

</bundles_post_ra>
